<compile_context>
chip_gen: v6e
topology: v6e:2x2x1
jax: 0.10.0
libtpu: 0.0.40
codegen_flags: <defaults>
</compile_context>

<pallas_src>
import jax
import jax.numpy as jnp
from jax.experimental import pallas as pl
from jax.experimental.pallas import tpu as pltpu

# ---- problem sizes (small, consistent with a toy VAE forward) --------------
B = 2            # logical batch
D_IN = 32        # flattened input dim
LATENT = 8       # latent_dim

OUT_PAD = 128                   # lane-dense output width (>= D_IN + 2*LATENT)
_PAYLOAD = D_IN + 2 * LATENT    # 48 useful lanes: [recons | mu | log_var]
MAX_TB = 512                    # batch-tile cap (per-step working set stays small)


# ----------------------------------------------------------------------------
# Kernels (trace-time specialized on not_use_var)
# ----------------------------------------------------------------------------
def _vae_fwd_kernel_stoch(x_ref, eps_ref, enc_ref, dec_ref, sel_ref, out_ref):
    """encode -> reparameterize(z = eps*std + mu) -> decode, one batch tile.

    x_ref   : [TB, D_IN]
    eps_ref : [TB, LATENT]              host-generated N(0,1)
    enc_ref : [D_IN + 1, 2*LATENT]      rows 0..D_IN-1 = W_enc, row D_IN = b_enc
    dec_ref : [LATENT + 1, OUT_PAD]     W_dec/b_dec pre-padded into lanes 0..D_IN-1
    sel_ref : [2*LATENT, OUT_PAD]       constant selector -> lanes D_IN..D_IN+2L-1
    out_ref : [TB, OUT_PAD]             lane-dense [recons | mu | log_var | 0]
    """
    x = x_ref[...]

    # ---- encode: single linear layer, split into (mu, log_var) ----
    h = jnp.dot(x, enc_ref[:D_IN, :], preferred_element_type=jnp.float32)
    h = h + enc_ref[D_IN:, :]                     # folded bias (last row)
    mu = h[:, :LATENT]
    log_var = h[:, LATENT:]

    # ---- reparameterize: z = eps * exp(0.5*log_var) + mu (kept in vregs) ----
    z = eps_ref[...] * jnp.exp(0.5 * log_var) + mu

    # ---- decode + lane placement, all on the MXU ----
    out = jnp.dot(z, dec_ref[:LATENT, :], preferred_element_type=jnp.float32)
    out = out + dec_ref[LATENT:, :]               # folded bias (padded row)
    out = out + jnp.dot(h, sel_ref[...], preferred_element_type=jnp.float32)
    out_ref[...] = out


def _vae_fwd_kernel_det(x_ref, enc_ref, dec_ref, sel_ref, out_ref):
    """Deterministic variant (not_use_var=True): z = mu. No eps, no exp."""
    x = x_ref[...]

    h = jnp.dot(x, enc_ref[:D_IN, :], preferred_element_type=jnp.float32)
    h = h + enc_ref[D_IN:, :]
    mu = h[:, :LATENT]

    out = jnp.dot(mu, dec_ref[:LATENT, :], preferred_element_type=jnp.float32)
    out = out + dec_ref[LATENT:, :]
    out = out + jnp.dot(h, sel_ref[...], preferred_element_type=jnp.float32)
    out_ref[...] = out


# ----------------------------------------------------------------------------
# Wrapper
# ----------------------------------------------------------------------------
def base_vae_forward(x, enc_p, dec_p, *, key=None, not_use_var=False):
    """Pallas-backed BaseVAE.forward. Returns (recons, input, mu, log_var)."""
    b, d_in = x.shape
    assert d_in == D_IN and enc_p.shape == (D_IN + 1, 2 * LATENT)
    assert dec_p.shape == (LATENT + 1, D_IN)

    # Batch tiling: big tiles (HBM-roofline friendly), sublane-aligned (x8).
    b8 = ((b + 7) // 8) * 8
    tb = min(b8, MAX_TB)
    n_tiles = pl.cdiv(b8, tb)
    b_pad = n_tiles * tb
    x_pad = jnp.pad(x, ((0, b_pad - b), (0, 0))) if b_pad != b else x

    # Decoder weights/bias pre-padded to the OUT_PAD-wide slab (recons lanes),
    # constant selector places [mu | log_var] at lanes D_IN..D_IN+2*LATENT-1.
    dec_pad = jnp.pad(dec_p, ((0, 0), (0, OUT_PAD - D_IN)))
    sel = jnp.pad(jnp.eye(2 * LATENT, dtype=jnp.float32),
                  ((0, 0), (D_IN, OUT_PAD - _PAYLOAD)))

    out_shape = jax.ShapeDtypeStruct((b_pad, OUT_PAD), jnp.float32)
    out_spec = pl.BlockSpec((tb, OUT_PAD), lambda i: (i, 0))
    cparams = pltpu.CompilerParams(dimension_semantics=("parallel",))

    if not_use_var:
        slab = pl.pallas_call(
            _vae_fwd_kernel_det,
            out_shape=out_shape,
            grid=(n_tiles,),
            in_specs=[
                pl.BlockSpec((tb, D_IN), lambda i: (i, 0)),
                pl.BlockSpec((D_IN + 1, 2 * LATENT), lambda i: (0, 0)),
                pl.BlockSpec((LATENT + 1, OUT_PAD), lambda i: (0, 0)),
                pl.BlockSpec((2 * LATENT, OUT_PAD), lambda i: (0, 0)),
            ],
            out_specs=out_spec,
            compiler_params=cparams,
        )(x_pad, enc_p, dec_pad, sel)
    else:
        if key is None:
            key = jax.random.PRNGKey(0)
        eps = jax.random.normal(key, (b_pad, LATENT), jnp.float32)
        slab = pl.pallas_call(
            _vae_fwd_kernel_stoch,
            out_shape=out_shape,
            grid=(n_tiles,),
            in_specs=[
                pl.BlockSpec((tb, D_IN), lambda i: (i, 0)),
                pl.BlockSpec((tb, LATENT), lambda i: (i, 0)),
                pl.BlockSpec((D_IN + 1, 2 * LATENT), lambda i: (0, 0)),
                pl.BlockSpec((LATENT + 1, OUT_PAD), lambda i: (0, 0)),
                pl.BlockSpec((2 * LATENT, OUT_PAD), lambda i: (0, 0)),
            ],
            out_specs=out_spec,
            compiler_params=cparams,
        )(x_pad, eps, enc_p, dec_pad, sel)

    recons = slab[:b, :D_IN]
    mu = slab[:b, D_IN:D_IN + LATENT]
    log_var = slab[:b, D_IN + LATENT:_PAYLOAD]
    return recons, x, mu, log_var


def init_params(key):
    """Deterministic init; biases pre-folded as the last row of each matrix."""
    k1, k2, k3, k4 = jax.random.split(key, 4)
    we = jax.random.normal(k1, (D_IN, 2 * LATENT), jnp.float32) * 0.1
    be = jax.random.normal(k2, (1, 2 * LATENT), jnp.float32) * 0.01
    wd = jax.random.normal(k3, (LATENT, D_IN), jnp.float32) * 0.1
    bd = jax.random.normal(k4, (1, D_IN), jnp.float32) * 0.01
    enc_p = jnp.concatenate([we, be], axis=0)   # [D_IN + 1, 2*LATENT]
    dec_p = jnp.concatenate([wd, bd], axis=0)   # [LATENT + 1, D_IN]
    return enc_p, dec_p


def _reference_forward(x, enc_p, dec_p, eps=None):
    """Pure-JAX reference for BaseVAE.forward (eps=None -> not_use_var path)."""
    we, be = enc_p[:D_IN], enc_p[D_IN:]
    wd, bd = dec_p[:LATENT], dec_p[LATENT:]
    h = x @ we + be
    mu, log_var = h[:, :LATENT], h[:, LATENT:]
    z = mu if eps is None else eps * jnp.exp(0.5 * log_var) + mu
    recons = z @ wd + bd
    return recons, mu, log_var


if __name__ == "__main__":
    key = jax.random.PRNGKey(0)
    k_x, k_p, k_eps = jax.random.split(key, 3)

    x = jax.random.normal(k_x, (B, D_IN), jnp.float32)
    enc_p, dec_p = init_params(k_p)

    # ---- stochastic path (reparameterize with eps ~ N(0,1)) ----
    recons, inp, mu, log_var = base_vae_forward(x, enc_p, dec_p, key=k_eps)
    jax.block_until_ready((recons, inp, mu, log_var))

    # Rebuild the exact eps the wrapper used (batch padded up to a multiple of 8).
    b8 = ((B + 7) // 8) * 8
    eps_full = jax.random.normal(k_eps, (b8, LATENT), jnp.float32)
    r_ref, mu_ref, lv_ref = _reference_forward(x, enc_p, dec_p, eps=eps_full[:B])

    assert recons.shape == (B, D_IN)
    assert jnp.allclose(recons, r_ref, atol=1e-4, rtol=1e-4)
    assert jnp.allclose(mu, mu_ref, atol=1e-4, rtol=1e-4)
    assert jnp.allclose(log_var, lv_ref, atol=1e-4, rtol=1e-4)
    assert jnp.allclose(inp, x, atol=0, rtol=0)

    # ---- deterministic path (not_use_var=True -> z = mu) ----
    r2, _, mu2, lv2 = base_vae_forward(x, enc_p, dec_p, not_use_var=True)
    jax.block_until_ready(r2)
    r2_ref, _, _ = _reference_forward(x, enc_p, dec_p, eps=None)
    assert jnp.allclose(r2, r2_ref, atol=1e-4, rtol=1e-4)
    assert jnp.allclose(mu2, mu_ref, atol=1e-4, rtol=1e-4)
    assert jnp.allclose(lv2, lv_ref, atol=1e-4, rtol=1e-4)

    # TODO(synk): loss_function / sample / generate are host-side conveniences
    # built from this same forward (MSE+KLD reduction would need a cross-tile
    # reduction that conflicts with the "parallel" batch axis) and are left out
    # of the forward hot path.
    print("KERNEL_OK")
</pallas_src>

<mosaic_0001>
module attributes {stable_mosaic.version = 11 : i64} {
  func.func @_vae_fwd_kernel_stoch(%arg0: i32, %arg1: memref<8x32xf32, #tpu.memory_space<vmem>>, %arg2: memref<8x8xf32, #tpu.memory_space<vmem>>, %arg3: memref<33x16xf32, #tpu.memory_space<vmem>>, %arg4: memref<9x128xf32, #tpu.memory_space<vmem>>, %arg5: memref<16x128xf32, #tpu.memory_space<vmem>>, %arg6: memref<8x128xf32, #tpu.memory_space<vmem>>) attributes {dimension_semantics = [#tpu.dimension_semantics<parallel>], iteration_bounds = array<i64: 1>, scalar_prefetch = 0 : i64, scratch_operands = 0 : i64, tpu.core_type = #tpu.core_type<tc>, window_params = [{transform_indices = @transform_0, window_bounds = array<i64: 8, 32>}, {transform_indices = @transform_1, window_bounds = array<i64: 8, 8>}, {pipeline_mode = #tpu.pipeline_mode<synchronous>, transform_indices = @transform_2, window_bounds = array<i64: 33, 16>}, {pipeline_mode = #tpu.pipeline_mode<synchronous>, transform_indices = @transform_3, window_bounds = array<i64: 9, 128>}, {pipeline_mode = #tpu.pipeline_mode<synchronous>, transform_indices = @transform_4, window_bounds = array<i64: 16, 128>}, {transform_indices = @transform_5, window_bounds = array<i64: 8, 128>}]} {
    %c0 = arith.constant 0 : index
    %c0_0 = arith.constant 0 : index
    %0 = vector.load %arg1[%c0, %c0_0] : memref<8x32xf32, #tpu.memory_space<vmem>>, vector<8x32xf32>
    %c0_1 = arith.constant 0 : index
    %c0_2 = arith.constant 0 : index
    %1 = vector.load %arg3[%c0_1, %c0_2] : memref<33x16xf32, #tpu.memory_space<vmem>>, vector<32x16xf32>
    %cst = arith.constant dense<0.000000e+00> : vector<8x16xf32>
    %2 = tpu.matmul %0, %1, %cst {dimension_numbers = #tpu.dot_dimension_numbers<[1], [0], [0], [1], [0, 0, 1, 1], [], []>} : vector<8x32xf32>, vector<32x16xf32>, vector<8x16xf32> -> vector<8x16xf32>
    %c32 = arith.constant 32 : index
    %c0_3 = arith.constant 0 : index
    %3 = vector.load %arg3[%c32, %c0_3] : memref<33x16xf32, #tpu.memory_space<vmem>>, vector<1x16xf32>
    %4 = vector.broadcast %3 : vector<1x16xf32> to vector<8x16xf32>
    %5 = arith.addf %2, %4 : vector<8x16xf32>
    %6 = vector.extract_strided_slice %5 {offsets = [0, 0], sizes = [8, 8], strides = [1, 1]} : vector<8x16xf32> to vector<8x8xf32>
    %7 = vector.extract_strided_slice %5 {offsets = [0, 8], sizes = [8, 8], strides = [1, 1]} : vector<8x16xf32> to vector<8x8xf32>
    %c0_4 = arith.constant 0 : index
    %c0_5 = arith.constant 0 : index
    %8 = vector.load %arg2[%c0_4, %c0_5] : memref<8x8xf32, #tpu.memory_space<vmem>>, vector<8x8xf32>
    %cst_6 = arith.constant 5.000000e-01 : f32
    %9 = vector.broadcast %cst_6 : f32 to vector<8x8xf32>
    %10 = arith.mulf %9, %7 : vector<8x8xf32>
    %11 = math.exp %10 : vector<8x8xf32>
    %12 = arith.mulf %8, %11 : vector<8x8xf32>
    %13 = arith.addf %12, %6 : vector<8x8xf32>
    %c0_7 = arith.constant 0 : index
    %c0_8 = arith.constant 0 : index
    %14 = vector.load %arg4[%c0_7, %c0_8] : memref<9x128xf32, #tpu.memory_space<vmem>>, vector<8x128xf32>
    %cst_9 = arith.constant dense<0.000000e+00> : vector<8x128xf32>
    %15 = tpu.matmul %13, %14, %cst_9 {dimension_numbers = #tpu.dot_dimension_numbers<[1], [0], [0], [1], [0, 0, 1, 1], [], []>} : vector<8x8xf32>, vector<8x128xf32>, vector<8x128xf32> -> vector<8x128xf32>
    %c8 = arith.constant 8 : index
    %c0_10 = arith.constant 0 : index
    %16 = vector.load %arg4[%c8, %c0_10] : memref<9x128xf32, #tpu.memory_space<vmem>>, vector<1x128xf32>
    %17 = vector.broadcast %16 : vector<1x128xf32> to vector<8x128xf32>
    %18 = arith.addf %15, %17 : vector<8x128xf32>
    %c0_11 = arith.constant 0 : index
    %c0_12 = arith.constant 0 : index
    %19 = vector.load %arg5[%c0_11, %c0_12] : memref<16x128xf32, #tpu.memory_space<vmem>>, vector<16x128xf32>
    %cst_13 = arith.constant dense<0.000000e+00> : vector<8x128xf32>
    %20 = tpu.matmul %5, %19, %cst_13 {dimension_numbers = #tpu.dot_dimension_numbers<[1], [0], [0], [1], [0, 0, 1, 1], [], []>} : vector<8x16xf32>, vector<16x128xf32>, vector<8x128xf32> -> vector<8x128xf32>
    %21 = arith.addf %18, %20 : vector<8x128xf32>
    %c0_14 = arith.constant 0 : index
    %c0_15 = arith.constant 0 : index
    %22 = vector.load %arg6[%c0_14, %c0_15] : memref<8x128xf32, #tpu.memory_space<vmem>>, vector<8x128xf32>
    tpu.vector_store %arg6[%c0_14, %c0_15], %21 {strides = array<i32>} : memref<8x128xf32, #tpu.memory_space<vmem>>, vector<8x128xf32>,
    return
  }
  func.func @transform_0(%arg0: i32) -> (i32, i32) {
    %c0_i32 = arith.constant 0 : i32
    %c0_i32_0 = arith.constant 0 : i32
    return %arg0, %c0_i32 : i32, i32
  }
  func.func @transform_1(%arg0: i32) -> (i32, i32) {
    %c0_i32 = arith.constant 0 : i32
    %c0_i32_0 = arith.constant 0 : i32
    return %arg0, %c0_i32 : i32, i32
  }
  func.func @transform_2(%arg0: i32) -> (i32, i32) {
    %c0_i32 = arith.constant 0 : i32
    %c0_i32_0 = arith.constant 0 : i32
    %c0_i32_1 = arith.constant 0 : i32
    return %c0_i32, %c0_i32_0 : i32, i32
  }
  func.func @transform_3(%arg0: i32) -> (i32, i32) {
    %c0_i32 = arith.constant 0 : i32
    %c0_i32_0 = arith.constant 0 : i32
    %c0_i32_1 = arith.constant 0 : i32
    return %c0_i32, %c0_i32_0 : i32, i32
  }
  func.func @transform_4(%arg0: i32) -> (i32, i32) {
    %c0_i32 = arith.constant 0 : i32
    %c0_i32_0 = arith.constant 0 : i32
    %c0_i32_1 = arith.constant 0 : i32
    return %c0_i32, %c0_i32_0 : i32, i32
  }
  func.func @transform_5(%arg0: i32) -> (i32, i32) {
    %c0_i32 = arith.constant 0 : i32
    %c0_i32_0 = arith.constant 0 : i32
    return %arg0, %c0_i32 : i32, i32
  }
}

</mosaic_0001>

<bundles_post_ra>
// kernel: tpu_custom_call.1
= control target key start
LH: loop header
LB: loop body
LE: loop exit
PB: predicated region body
PF: predicated region fallthrough
CT: control target
= control target key end

     0   :  { %v353_v1 = vmov 0.0   ;;  %vm354_vm0 = vmmov 0   ;;  %s426_s0 = inlined_call_operand.vmem [shape: f32[8,32], index: 0, kind: input, shape index: {}]   ;;  %s427_s1 = inlined_call_operand.vmem [shape: f32[8,8], index: 1, kind: input, shape index: {}]   ;;  %s428_s2 = inlined_call_operand.vmem [shape: f32[33,16], index: 2, kind: input, shape index: {}]   ;;  %s429_s3 = inlined_call_operand.vmem [shape: f32[9,128], index: 3, kind: input, shape index: {}]   ;;  %s430_s4 = inlined_call_operand.vmem [shape: f32[16,128], index: 4, kind: input, shape index: {}]   ;;  %s431_s5 = inlined_call_operand.hbm [shape: f32[8,128], index: 5, kind: output, shape index: {}]  }
   0x1   :  { %v25_v0 = vld [vmem:[%s428_s2 + $0x18] sm:$0xff]  ;;  %302 = vmatprep.subr.mxu0 %v353_v1  ;;  %v24_v2 = vld [vmem:[%s428_s2 + $0x10] sm:$0xff]  ;;  %310 = vmatprep.mubr.msk.f32.mxu0 %vm354_vm0, %v353_v1 }
   0x2   :  { %303 = vmatpush3.msra.mxu0 %v25_v0  ;;  %313 = vmatprep.subr.mxu1 %v353_v1 }
   0x3   :  { %10 = vsyncpa [#allocation3], 0  ;;  %304 = vmatprep.subr.mxu0 %v353_v1  ;;  %v23_v3 = vld [vmem:[%s428_s2 + $0x8] sm:$0xff]  ;;  %315 = vmatprep.mubr.msk.f32.mxu1 %vm354_vm0, %v353_v1  ;;  %v22_v4 = vld [vmem:[%s428_s2] sm:$0xff]  ;;  %vm31_vm1 = vcmask 261120   ;;  %vm121_vm2 = vcmask 64512  }
   0x4   :  { %305 = vmatpush3.msra.mxu0 %v24_v2  ;;  %v21_v5 = vld [vmem:[%s426_s0] sm:$0xff]  ;;  %s355_s0 = smov 120   ;;  %v196_v18 = vld [vmem:[%s430_s4 + $0x8] sm:$0xff]  ;;  %vm197_vm3 = vcmask 130048   ;;  %s356_s13 = smov [#allocation2]  }
   0x5   :  { %306 = vmatprep.subr.mxu0 %v353_v1  ;;  %v287_v6 = vld [vmem:[%s428_s2 + $0x20] ss:$0 sm:$0xff]  ;;  %v289_v20 = vld [vmem:[%s429_s3 + $0x8] ss:$0 sm:$0xff]  ;;  %s279_s14 = sshll.u32 %s356_s13, 4  ;;  %s280_s14 = int_to_ptr.vmem [resolvable:$true] %s279_s14 }
   0x6   :  { %307 = vmatpush3.msra.mxu0 %v23_v3  ;;  %v115_v12 = vld [vmem:[%s429_s3] sm:$0xff]  ;;  %p336_p1 = scmp.lt.s32.totalorder %s280_s14, %s280_s14 }
   0x7   :  { %308 = vmatprep.subr.mxu0 %v353_v1  ;;  %314 = vmatpush3.msra.mxu1 %v115_v12  ;;  %v105_v14 = vld [vmem:[%s427_s1] sm:$0xff] }
   0x8   :  { %309 = vmatpush3.msra.mxu0 %v22_v4  ;;  %318 = vmatprep.subr.mxu1 %v353_v1  ;;  %v195_v19 = vld [vmem:[%s430_s4] sm:$0xff]  ;;  %s331_s4 = scalar_lea.vmem %s280_s14, 128 }
   0x9   :  { %311 = vmatmul.mubr.msk.f32.vlgmr.msra.gmra.mxu0 %vm31_vm1, %v21_v5  ;;  %p332_p0 = scmp.ne.s32.totalorder %s280_s14, %s331_s4  ;;  %p337_p2 = scmp.lt.s32.totalorder %s331_s4, %s331_s4 }
   0xb   :  { %p338_p3 = por %p337_p2, %p336_p1 }
   0xd   :  { %p339_p4 = pnand %p338_p3, %p332_p0 }
  0xc9   :  { %v101_v7 = vpop.f32.mrf.mxu0 }
  0xca   :  { %v102_v8 = vadd.f32 %v287_v6, %v101_v7 }
  0xcb   :  { %v312_v9 = vpop.f32.mrf.mxu0 }
  0xcc   :  { %v106_v10 = vmul.f32 0.5, %v102_v8 }
  0xce   :  { %v107_v11 = vmul.f32 1.442695, %v106_v10 }
  0xd0   :  { %329 = vpow2.f32 %v107_v11 }
  0xdd   :  { %v330_v13 = vpop.eup %329 }
  0xde   :  { %110 = vrot.lane.b32.xlu0 %v330_v13, %s355_s0 }
 0x150   :  { %v111_v15 = vpop.permute.xlu0 %110 }
 0x151   :  { %v113_v16 = vmul.f32 %v111_v15, %v105_v14 }
 0x153   :  { %v114_v17 = vadd.f32 %v113_v16, %v102_v8 }
 0x155   :  { %316 = vmatmul.mubr.msk.f32.vlgmr.msra.gmra.mxu1 %vm121_vm2, %v114_v17 }
 0x156   :  { %319 = vmatpush3.msra.mxu1 %v196_v18  ;;  %322 = vmatprep.mubr.msk.f32.mxu1 %vm354_vm0, %v353_v1 }
 0x157   :  { %320 = vmatprep.subr.mxu1 %v353_v1 }
 0x158   :  { %321 = vmatpush3.msra.mxu1 %v195_v19 }
 0x159   :  { %323 = vmatmul.mubr.msk.f32.vlgmr.msra.gmra.mxu1 %vm197_vm3, %v102_v8 }
 0x215   :  { %v191_v21 = vpop.f32.mrf.mxu1 }
 0x216   :  { %v192_v23 = vadd.f32 %v289_v20, %v191_v21 }
 0x217   :  { %v317_v22 = vpop.f32.mrf.mxu1 }
 0x219   :  { %v267_v24 = vpop.f32.mrf.mxu1 }
 0x21a   :  { %v271_v25 = vadd.f32 %v267_v24, %v192_v23 }
 0x21b   :  { %v324_v26 = vpop.f32.mrf.mxu1 }
 0x21c   :  { %272 = vst [vmem:[#allocation2] sm:$0xff] %v271_v25 }
 0x21d   :  { %342 = shalt.err (!%p339_p4)
}
 0x21e   :  { %282 = dma.vmem_to_hbm [thread:$0]  %s280_s14, 128, %s431_s5, [#allocation3]  }
 0x21f   :  { %351 = dma.done.wait [#allocation3], 128  }
 0x220   :  { %352 = vsyncadd [#allocation3], 4294967168 }
 0x221   :  { %286 = vsyncpa [#allocation3], 1 }

</bundles_post_ra>
